<compile_context>
chip_gen: v7x
topology: tpu7x:2x2x1
jax: 0.10.0
libtpu: 0.0.40
codegen_flags: <defaults>
</compile_context>

<pallas_src>
import functools

import jax
import jax.numpy as jnp
from jax.experimental import pallas as pl
from jax.experimental.pallas import tpu as pltpu


def _cross_entropy_kernel(x_ref, y_ref, out_ref, *, n_total, tile_n, need_mask):
    # x_ref:   (TN, C)  logits block in VMEM (native dtype, upcast here)
    # y_ref:   (TN, 1)  int32 targets block in VMEM (lane-padded to 128)
    # out_ref: (1, 8, 128) f32 per-tile partial-sum block (broadcast scalar)
    i = pl.program_id(0)

    x = x_ref[...].astype(jnp.float32)                      # (TN, C)
    y = y_ref[...]                                          # (TN, 1)

    # numerically-stable logsumexp along the class axis (per row)
    m = jnp.max(x, axis=-1, keepdims=True)                  # (TN, 1)
    lse = jnp.log(jnp.sum(jnp.exp(x - m), axis=-1, keepdims=True)) + m

    # target-logit "hit" mask (gather via select, never multiply-by-mask)
    cls_idx = jax.lax.broadcasted_iota(jnp.int32, x.shape, 1)   # (TN, C)
    hit = cls_idx == y                                          # (TN, C)

    def _tile_sum_unmasked():
        # single full-tile reductions; no per-row keepdims gather
        tgt_sum = jnp.sum(jnp.where(hit, x, 0.0))
        return jnp.sum(lse) - tgt_sum

    def _tile_sum_masked():
        # only the ragged last tile pays for the row-validity select
        row = jax.lax.broadcasted_iota(jnp.int32, lse.shape, 0) + i * tile_n
        valid = row < n_total                                   # (TN, 1)
        tgt_sum = jnp.sum(jnp.where(jnp.logical_and(hit, valid), x, 0.0))
        return jnp.sum(jnp.where(valid, lse, 0.0)) - tgt_sum

    if need_mask:
        tile_sum = jax.lax.cond(i == pl.num_programs(0) - 1,
                                _tile_sum_masked, _tile_sum_unmasked)
    else:
        tile_sum = _tile_sum_unmasked()

    # distinct, (8,128)-conforming output block per grid step -> safe with
    # "parallel" semantics (each TensorCore writes only its own blocks).
    out_ref[...] = jnp.broadcast_to(tile_sum, out_ref.shape)


def _sublane_multiple(dtype):
    # f32 -> 8 sublanes, bf16/f16 -> 16, int8/fp8 -> 32
    itemsize = jnp.dtype(dtype).itemsize
    return max(8, 32 // max(itemsize, 1))


def _choose_tile_n(n, c, x_dtype):
    """Largest batch tile that fits the VMEM budget (double-buffered x AND y)."""
    sub = _sublane_multiple(x_dtype)
    if n <= sub:
        return n                         # block equal to full array dim is legal

    lanes = pl.cdiv(c, 128) * 128
    x_row = lanes * jnp.dtype(x_dtype).itemsize   # bytes per row, lane-padded
    y_row = 128 * 4                                # (TN,1) int32 lane-pads to 128 lanes
    per_row_2buf = 2 * (x_row + y_row)             # both inputs double-buffered

    try:
        cap = pltpu.get_tpu_info().vmem_capacity_bytes
    except Exception:  # interpret mode / unknown chip
        cap = 64 << 20
    budget = min(cap // 4, 24 << 20)               # chip-aware, leave headroom

    tn = min(n, 8192, budget // per_row_2buf)
    tn = max(sub, (tn // sub) * sub)               # keep dtype sublane tiling
    return tn


def my_loss(x, y, *, tile_n=None):
    """Equivalent of My_loss().forward(x, y): mean cross-entropy loss.

    x: (N, C) float logits (f32 or bf16 — prefer bf16 on v5e; upcast is in-kernel)
    y: (N,)   integer class indices in [0, C)
    returns: scalar float32
    """
    n, c = x.shape
    if tile_n is None:
        tile_n = _choose_tile_n(n, c, x.dtype)
    y2d = y.astype(jnp.int32).reshape(n, 1)
    num_tiles = pl.cdiv(n, tile_n)
    need_mask = (n % tile_n) != 0

    kernel = functools.partial(
        _cross_entropy_kernel, n_total=n, tile_n=tile_n, need_mask=need_mask)

    # explicit scoped-VMEM budget: 2 buffers x (x block + lane-padded y block) + slack
    lanes = pl.cdiv(c, 128) * 128
    x_blk = tile_n * lanes * jnp.dtype(x.dtype).itemsize
    y_blk = tile_n * 128 * 4
    vmem_limit = int(max(16 << 20, 2 * (x_blk + y_blk) + (4 << 20)))

    partials = pl.pallas_call(
        kernel,
        out_shape=jax.ShapeDtypeStruct((num_tiles, 8, 128), jnp.float32),
        grid=(num_tiles,),
        in_specs=[
            pl.BlockSpec((tile_n, c), lambda i: (i, 0)),
            pl.BlockSpec((tile_n, 1), lambda i: (i, 0)),
        ],
        out_specs=pl.BlockSpec((1, 8, 128), lambda i: (i, 0, 0)),
        compiler_params=pltpu.CompilerParams(
            dimension_semantics=("parallel",),
            vmem_limit_bytes=vmem_limit),
    )(x, y2d)

    # tiny final reduction over per-tile partials + mean divide (done in XLA)
    return jnp.sum(partials[:, 0, 0]) / jnp.float32(n)


if __name__ == "__main__":
    num_classes = 39   # matches My_loss(num_classes=39)

    key = jax.random.PRNGKey(0)
    kx1, ky1, kx2, ky2, kx3, ky3 = jax.random.split(key, 6)

    def ref_loss(xf32, y):
        n = xf32.shape[0]
        return -jnp.mean(jax.nn.log_softmax(xf32, axis=-1)[jnp.arange(n), y])

    # Case 1: small batch, single tile (auto tile choice).
    n1 = 8
    x1 = jax.random.normal(kx1, (n1, num_classes), dtype=jnp.float32)
    y1 = jax.random.randint(ky1, (n1,), 0, num_classes, dtype=jnp.int32)
    loss1 = my_loss(x1, y1)
    jax.block_until_ready(loss1)
    assert jnp.allclose(loss1, ref_loss(x1, y1), atol=1e-4, rtol=1e-4), loss1

    # Case 2: multi-tile grid with a ragged last tile (mask only on last tile,
    # parallel per-tile partials).
    n2 = 37
    x2 = jax.random.normal(kx2, (n2, num_classes), dtype=jnp.float32)
    y2 = jax.random.randint(ky2, (n2,), 0, num_classes, dtype=jnp.int32)
    loss2 = my_loss(x2, y2, tile_n=8)
    jax.block_until_ready(loss2)
    assert jnp.allclose(loss2, ref_loss(x2, y2), atol=1e-4, rtol=1e-4), loss2

    # Case 3: bf16 logits, TN multiple of 16, ragged last tile.
    n3 = 40
    x3 = jax.random.normal(kx3, (n3, num_classes), dtype=jnp.float32).astype(jnp.bfloat16)
    y3 = jax.random.randint(ky3, (n3,), 0, num_classes, dtype=jnp.int32)
    loss3 = my_loss(x3, y3, tile_n=16)
    jax.block_until_ready(loss3)
    assert jnp.allclose(loss3, ref_loss(x3.astype(jnp.float32), y3),
                        atol=1e-4, rtol=1e-4), loss3

    print("KERNEL_OK")
</pallas_src>

<mosaic_0001>
module attributes {stable_mosaic.version = 11 : i64} {
  func.func @_cross_entropy_kernel(%arg0: i32, %arg1: memref<8x39xf32, #tpu.memory_space<vmem>>, %arg2: memref<8x1xi32, #tpu.memory_space<vmem>>, %arg3: memref<1x8x128xf32, #tpu.memory_space<vmem>>) attributes {dimension_semantics = [#tpu.dimension_semantics<parallel>], iteration_bounds = array<i64: 1>, scalar_prefetch = 0 : i64, scratch_operands = 0 : i64, tpu.core_type = #tpu.core_type<tc>, window_params = [{transform_indices = @transform_0, window_bounds = array<i64: 8, 39>}, {transform_indices = @transform_1, window_bounds = array<i64: 8, 1>}, {transform_indices = @transform_2, window_bounds = array<i64: 1, 8, 128>}]} {
    %c0 = arith.constant 0 : index
    %c0_0 = arith.constant 0 : index
    %0 = vector.load %arg1[%c0, %c0_0] : memref<8x39xf32, #tpu.memory_space<vmem>>, vector<8x39xf32>
    %c0_1 = arith.constant 0 : index
    %c0_2 = arith.constant 0 : index
    %1 = vector.load %arg2[%c0_1, %c0_2] : memref<8x1xi32, #tpu.memory_space<vmem>>, vector<8x1xi32>
    %cst = arith.constant dense<0xFF800000> : vector<8xf32>
    %2 = vector.multi_reduction <maximumf>, %0, %cst [1] : vector<8x39xf32> to vector<8xf32>
    %3 = vector.shape_cast %2 : vector<8xf32> to vector<8x1xf32>
    %4 = vector.broadcast %3 : vector<8x1xf32> to vector<8x39xf32>
    %5 = arith.subf %0, %4 : vector<8x39xf32>
    %6 = math.exp %5 : vector<8x39xf32>
    %cst_3 = arith.constant dense<0.000000e+00> : vector<8xf32>
    %7 = vector.multi_reduction <add>, %6, %cst_3 [1] : vector<8x39xf32> to vector<8xf32>
    %8 = vector.shape_cast %7 : vector<8xf32> to vector<8x1xf32>
    %9 = math.log %8 : vector<8x1xf32>
    %10 = arith.addf %9, %3 : vector<8x1xf32>
    %11 = tpu.iota {dimensions = array<i32: 1>} : vector<8x39xi32>
    %12 = vector.broadcast %1 : vector<8x1xi32> to vector<8x39xi32>
    %13 = arith.cmpi eq, %11, %12 : vector<8x39xi32>
    %cst_4 = arith.constant 0.000000e+00 : f32
    %14 = vector.broadcast %cst_4 : f32 to vector<8x39xf32>
    %15 = arith.select %13, %0, %14 : vector<8x39xi1>, vector<8x39xf32>
    %16 = vector.shape_cast %15 : vector<8x39xf32> to vector<1x8x39xf32>
    %cst_5 = arith.constant dense<0.000000e+00> : vector<1xf32>
    %17 = vector.multi_reduction <add>, %16, %cst_5 [1, 2] : vector<1x8x39xf32> to vector<1xf32>
    %18 = vector.shape_cast %17 : vector<1xf32> to vector<1x1x1xf32>
    %19 = vector.extract %18[0, 0, 0] : f32 from vector<1x1x1xf32>
    %20 = vector.shape_cast %10 : vector<8x1xf32> to vector<1x8x1xf32>
    %cst_6 = arith.constant dense<0.000000e+00> : vector<1xf32>
    %21 = vector.multi_reduction <add>, %20, %cst_6 [1, 2] : vector<1x8x1xf32> to vector<1xf32>
    %22 = vector.shape_cast %21 : vector<1xf32> to vector<1x1x1xf32>
    %23 = vector.extract %22[0, 0, 0] : f32 from vector<1x1x1xf32>
    %24 = arith.subf %23, %19 : f32
    %25 = vector.broadcast %24 : f32 to vector<1x8x128xf32>
    %c0_7 = arith.constant 0 : index
    %c0_8 = arith.constant 0 : index
    %c0_9 = arith.constant 0 : index
    %26 = vector.load %arg3[%c0_7, %c0_8, %c0_9] : memref<1x8x128xf32, #tpu.memory_space<vmem>>, vector<1x8x128xf32>
    tpu.vector_store %arg3[%c0_7, %c0_8, %c0_9], %25 {strides = array<i32>} : memref<1x8x128xf32, #tpu.memory_space<vmem>>, vector<1x8x128xf32>,
    return
  }
  func.func @transform_0(%arg0: i32) -> (i32, i32) {
    %c0_i32 = arith.constant 0 : i32
    %c0_i32_0 = arith.constant 0 : i32
    return %arg0, %c0_i32 : i32, i32
  }
  func.func @transform_1(%arg0: i32) -> (i32, i32) {
    %c0_i32 = arith.constant 0 : i32
    %c0_i32_0 = arith.constant 0 : i32
    return %arg0, %c0_i32 : i32, i32
  }
  func.func @transform_2(%arg0: i32) -> (i32, i32, i32) {
    %c0_i32 = arith.constant 0 : i32
    %c0_i32_0 = arith.constant 0 : i32
    %c0_i32_1 = arith.constant 0 : i32
    return %arg0, %c0_i32, %c0_i32_0 : i32, i32, i32
  }
}

</mosaic_0001>

<bundles_post_ra>
// kernel: tpu_custom_call.1
= control target key start
LH: loop header
LB: loop body
LE: loop exit
PB: predicated region body
PF: predicated region fallthrough
CT: control target
= control target key end

     0   :  { %vm14_vm0 = vcmask 318464   ;;  %s146_s0 = inlined_call_operand.vmem [shape: f32[8,39], index: 0, kind: input, shape index: {}]   ;;  %s147_s1 = inlined_call_operand.vmem [shape: s32[8,1], index: 1, kind: input, shape index: {}]   ;;  %s148_s2 = inlined_call_operand.hbm [shape: f32[1,8,128], index: 2, kind: output, shape index: {}]  }
   0x1   :  { %v12_v0 = vld [vmem:[%s146_s0] sm:$0xff] }
   0x2   :  { %7 = vsyncpa [#allocation3], 0  ;;  %v15_v1 = vsel %vm14_vm0, %v12_v0, -inf  ;;  %v13_v2 = vld [vmem:[%s147_s1] sm:$0xff]  ;;  %v108_v3 = vmov 0   ;;  %v27_v9 = vlaneseq  ;;  %vm44_vm2 = vcmask 7168  }
   0x3   :  { %16 = vmax.xlane.f32.xlu0 %v15_v1  ;;  %78 = vset.pattern.permute.xlu1 %v108_v3  ;;  %s109_s1 = smov [#allocation2]  }
   0x4   :  { %79 = vset.pattern.permute.xlu0 %v108_v3  ;;  %30 = vperm.xlu1 %78, %v13_v2   ;;  %v28_v10 = vand.u32 127, %v27_v9  ;;  %s64_s13 = sshll.u32 %s109_s1, 4  ;;  %s65_s13 = int_to_ptr.vmem [resolvable:$true] %s64_s13 }
   0x5   :  { %s84_s16 = scalar_lea.vmem %s65_s13, 128  ;;  %p89_p1 = scmp.lt.s32.totalorder %s65_s13, %s65_s13 }
   0x6   :  { %p85_p0 = scmp.ne.s32.totalorder %s65_s13, %s84_s16  ;;  %p90_p2 = scmp.lt.s32.totalorder %s84_s16, %s84_s16 }
   0x8   :  { %p91_p3 = por %p90_p2, %p89_p1 }
   0xa   :  { %p92_p4 = pnand %p91_p3, %p85_p0 }
  0x83   :  { %v31_v11 = vpop.permute.xlu1 %30 }
  0x84   :  { %vm32_vm1 = vcmp.eq.s32.totalorder %v28_v10, %v31_v11 }
  0x85   :  { %v33_v12 = vsel %vm32_vm1, %v12_v0, 0.0 }
  0x86   :  { %v34_v13 = vsel %vm14_vm0, %v33_v12, 0.0 }
  0x87   :  { %35 = vadd.xlane.f32.xlu1 %v34_v13 }
  0x90   :  { %v17_v4 = vpop.xlane.xlu0 %16 }
  0x91   :  { %v18_v5 = vsub.f32 %v12_v0, %v17_v4 }
  0x93   :  { %v19_v6 = vmul.f32 1.442695, %v18_v5 }
  0x95   :  { %80 = vpow2.f32 %v19_v6 }
  0x9f   :  { %v81_v7 = vpop.eup %80 }
  0xa0   :  { %v21_v8 = vsel %vm14_vm0, %v81_v7, 0.0 }
  0xa1   :  { %22 = vadd.xlane.f32.xlu0 %v21_v8 }
 0x114   :  { %v36_v19 = vpop.xlane.xlu1 %35 }
 0x115   :  { %v37_v20 = vrot.slane %v36_v19, 4 }
 0x117   :  { %v38_v21 = vadd.f32 %v37_v20, %v36_v19 }
 0x119   :  { %v39_v22 = vrot.slane %v38_v21, 2 }
 0x11b   :  { %v40_v23 = vadd.f32 %v39_v22, %v38_v21 }
 0x11d   :  { %v41_v24 = vrot.slane %v40_v23, 1 }
 0x11f   :  { %v42_v25 = vadd.f32 %v41_v24, %v40_v23 }
 0x121   :  { %72 = vpush %v42_v25 }
 0x12e   :  { %v23_v14 = vpop.xlane.xlu0 %22 }
 0x12f   :  { %82 = vlog2.f32 %v23_v14 }
 0x139   :  { %v83_v15 = vpop.eup %82 }
 0x13a   :  { %v25_v16 = vmul.f32 0.6931472, %v83_v15 }
 0x13c   :  { %v26_v17 = vadd.f32 %v25_v16, %v17_v4 }
 0x13e   :  { %v45_v18 = vsel %vm44_vm2, %v26_v17, 0.0 }
 0x13f   :  { %46 = vadd.xlane.f32.xlu0 %v45_v18 }
 0x152   :  { %s73_s0 = spop %72 }
 0x1cc   :  { %v47_v26 = vpop.xlane.xlu0 %46 }
 0x1cd   :  { %v48_v27 = vrot.slane %v47_v26, 4 }
 0x1cf   :  { %v49_v28 = vadd.f32 %v48_v27, %v47_v26 }
 0x1d1   :  { %v50_v29 = vrot.slane %v49_v28, 2 }
 0x1d3   :  { %v51_v30 = vadd.f32 %v50_v29, %v49_v28 }
 0x1d5   :  { %v52_v31 = vrot.slane %v51_v30, 1 }
 0x1d7   :  { %v53_v32 = vadd.f32 %v52_v31, %v51_v30 }
 0x1d9   :  { %74 = vpush %v53_v32 }
 0x20a   :  { %s75_s14 = spop %74 }
 0x20b   :  { %s55_s15 = ssub.f32 %s75_s14, %s73_s0 }
 0x20d   :  { %v56_v33 = vstv %s55_s15 }
 0x20e   :  { %57 = vst [vmem:[#allocation2] sm:$0xff] %v56_v33 }
 0x20f   :  { %95 = shalt.err (!%p92_p4)
}
 0x210   :  { %s96_s19 = scalar_lea.hbm %s148_s2, 128 }
 0x211   :  { %p97_p5 = scmp.ne.s32.totalorder %s148_s2, %s96_s19  ;;  %p100_p6 = scmp.lt.u32.totalorder %s96_s19, %s148_s2 }
 0x213   :  { %p102_p7 = pnand %p100_p6, %p97_p5 }
 0x215   :  { %105 = shalt.err (!%p102_p7)
}
 0x216   :  { %67 = dma.vmem_to_hbm [thread:$0]  %s65_s13, 128, %s148_s2, [#allocation3]  }
 0x217   :  { %106 = dma.done.wait [#allocation3], 128  }
 0x218   :  { %107 = vsyncadd [#allocation3], 4294967168 }
 0x219   :  { %71 = vsyncpa [#allocation3], 1 }

</bundles_post_ra>
